<compile_context>
chip_gen: v6e
topology: v6e:2x2x1
jax: 0.10.0
libtpu: 0.0.40
codegen_flags: <defaults>
</compile_context>

<pallas_src>
import functools
import math

import jax
import jax.numpy as jnp
from jax.experimental import pallas as pl
from jax.experimental.pallas import tpu as pltpu


def _selfonn_kernel(q, tile_n, x_ref, w_ref, ow_ref, b_ref, o_ref):
    """One (batch-tile, output-tile) block of the Self-ONN forward pass.

    x_ref:  [tm, I]            input tile (f32)
    w_ref:  [I, q*tile_n]      packed per-operator weights (f32 or bf16)
    ow_ref: [q, tile_n]        softmax'd + mask-renormalized operator weights
    b_ref:  [1, tile_n]        bias
    o_ref:  [tm, tile_n]       output tile
    """
    # Clip the input in f32 (matches the reference), then cast to the MXU compute
    # dtype carried by the packed weights (bf16 runs the MXU at native rate).
    x = jnp.clip(x_ref[...].astype(jnp.float32), -5.0, 5.0)

    # Single wide MXU matmul: [tm, I] x [I, q*tile_n] -> [tm, q*tile_n], f32 accum.
    wx = jnp.dot(x.astype(w_ref.dtype), w_ref[...],
                 preferred_element_type=jnp.float32)

    ow = ow_ref[...].astype(jnp.float32)                       # [q, tile_n]

    # Initialize the accumulator from the broadcast bias (saves a separate add).
    acc = jnp.broadcast_to(b_ref[...].astype(jnp.float32), o_ref.shape)

    # Static unroll over the q operators; slices are lane-aligned (tile_n % 128 == 0).
    for qi in range(q):
        z = wx[:, qi * tile_n:(qi + 1) * tile_n]
        if qi == 0:
            op = jnp.clip(z, -10.0, 10.0)                      # identity
        elif qi == 1:
            op = jnp.sin(jnp.clip(z, -10.0, 10.0))
        elif qi == 2:
            op = jnp.cos(jnp.clip(z, -10.0, 10.0))
        elif qi == 3:
            op = jnp.tanh(jnp.clip(z, -10.0, 10.0))
        else:                                                  # qi == 4 (q <= 5)
            op = jnp.exp(jnp.clip(z, -5.0, 5.0))               # single fused clip
        acc = acc + op * ow[qi:qi + 1, :]

    o_ref[...] = jnp.clip(acc, -10.0, 10.0).astype(o_ref.dtype)


def pack_selfonn_params(weights, operator_probs, bias, operator_mask, *,
                        tile_n=512, compute_dtype=jnp.float32):
    """Pre-pack parameters once (call outside the per-forward hot path).

    weights:        [output_size, input_size, q]   (PyTorch layout)
    operator_probs: [output_size, q]
    bias:           [output_size] or None
    operator_mask:  [output_size, q] bool
    Returns (w_packed [I, n_tiles*q*tile_n], ow_t [q, O_pad], b_pad [1, O_pad], tile_n).
    """
    out_size, in_size, q = weights.shape
    assert 1 <= q <= 5, "OptimizedSelfONN only defines operators for q <= 5"

    tile_n = min(tile_n, 128 * pl.cdiv(out_size, 128))
    assert tile_n % 128 == 0
    o_pad = tile_n * pl.cdiv(out_size, tile_n)
    pad_o = o_pad - out_size
    n_tiles = o_pad // tile_n

    # Inference branch of _compute_operator_weights: softmax -> mask -> renormalize.
    ow = jax.nn.softmax(operator_probs.astype(jnp.float32), axis=1)
    ow = ow * operator_mask.astype(jnp.float32)
    ow = ow / (jnp.sum(ow, axis=1, keepdims=True) + 1e-8)      # [O, q]
    ow_t = jnp.pad(jnp.transpose(ow, (1, 0)), ((0, 0), (0, pad_o)))   # [q, O_pad]

    # Pack weights so w_packed[i, j*q*tile_n + qi*tile_n + n] = weights[j*tile_n+n, i, qi].
    w = jnp.transpose(weights.astype(jnp.float32), (1, 0, 2))         # [I, O, q]
    w = jnp.pad(w, ((0, 0), (0, pad_o), (0, 0)))                      # [I, O_pad, q]
    w = w.reshape(in_size, n_tiles, tile_n, q).transpose(0, 1, 3, 2)  # [I, nt, q, tn]
    w_packed = w.reshape(in_size, n_tiles * q * tile_n).astype(compute_dtype)

    if bias is None:
        bias = jnp.zeros((out_size,), jnp.float32)
    b_pad = jnp.pad(bias.astype(jnp.float32), (0, pad_o)).reshape(1, o_pad)

    return w_packed, ow_t, b_pad, tile_n


def self_onn_forward(x, w_packed, ow_t, b_pad, *, q, out_size, tile_n,
                     block_batch=256):
    """Inference-mode forward of OptimizedSelfONN on pre-packed params.

    x: [batch, input_size] -> returns [batch, output_size].
    """
    batch, in_size = x.shape
    o_pad = b_pad.shape[1]
    n_tiles = o_pad // tile_n
    assert w_packed.shape == (in_size, n_tiles * q * tile_n)
    assert ow_t.shape == (q, o_pad)

    # Batch tiling: multiple of 8 (sublane rule) unless the whole batch fits one block.
    if batch <= block_batch:
        bb = batch
    else:
        assert block_batch % 8 == 0, "block_batch must be a multiple of 8"
        bb = block_batch
    grid = (pl.cdiv(batch, bb), n_tiles)

    # Explicit VMEM budget: double-buffered per-block footprint + headroom.
    x_bytes = bb * in_size * jnp.dtype(x.dtype).itemsize
    w_bytes = in_size * q * tile_n * jnp.dtype(w_packed.dtype).itemsize
    ow_bytes = q * tile_n * 4
    b_bytes = tile_n * 4
    out_bytes = bb * tile_n * jnp.dtype(x.dtype).itemsize
    vmem_bytes = 2 * (x_bytes + w_bytes + ow_bytes + b_bytes + out_bytes) + (2 << 20)
    vmem_bytes = int(min(max(vmem_bytes, 4 << 20), 64 << 20))
    # TODO(synk): auto-derive tile_n/block_batch per chip via pltpu.get_tpu_info
    # (v7x has 64 MiB VMEM vs 128 MiB on v5e/v6e); defaults here stay well under 32 MiB.

    kernel = functools.partial(_selfonn_kernel, q, tile_n)
    out_pad = pl.pallas_call(
        kernel,
        out_shape=jax.ShapeDtypeStruct((batch, o_pad), x.dtype),
        grid_spec=pltpu.PrefetchScalarGridSpec(
            num_scalar_prefetch=0,
            grid=grid,
            in_specs=[
                pl.BlockSpec((bb, in_size), lambda i, j: (i, 0)),          # x
                pl.BlockSpec((in_size, q * tile_n), lambda i, j: (0, j)),  # packed W
                pl.BlockSpec((q, tile_n), lambda i, j: (0, j)),            # op weights
                pl.BlockSpec((1, tile_n), lambda i, j: (0, j)),            # bias
            ],
            out_specs=pl.BlockSpec((bb, tile_n), lambda i, j: (i, j)),
        ),
        compiler_params=pltpu.CompilerParams(
            dimension_semantics=("parallel", "parallel"),
            vmem_limit_bytes=vmem_bytes),
    )(x, w_packed, ow_t, b_pad)

    return out_pad[:, :out_size]


def _reference_forward(x, weights, operator_probs, bias, operator_mask):
    """Pure-JAX transcription of OptimizedSelfONN._forward_impl (eval mode, q=5)."""
    xc = jnp.clip(x, -5.0, 5.0)
    wx = jnp.einsum('bi,oiq->boq', xc, weights)
    wx = jnp.clip(wx, -10.0, 10.0)
    ops = jnp.stack([
        wx[..., 0],
        jnp.sin(wx[..., 1]),
        jnp.cos(wx[..., 2]),
        jnp.tanh(wx[..., 3]),
        jnp.exp(jnp.clip(wx[..., 4], -5.0, 5.0)),
    ], axis=-1)
    ow = jax.nn.softmax(operator_probs, axis=1)
    ow = ow * operator_mask.astype(ow.dtype)
    ow = ow / (jnp.sum(ow, axis=1, keepdims=True) + 1e-8)
    out = jnp.einsum('boq,oq->bo', ops, ow) + bias
    return jnp.clip(out, -10.0, 10.0)


if __name__ == "__main__":
    # Small shapes consistent with the module: a dense Self-ONN layer on feature vectors.
    input_size, output_size, q = 32, 16, 5
    batch = 8

    key = jax.random.PRNGKey(0)
    kx, kw, kx2 = jax.random.split(key, 3)

    # Deterministic parameter init mirroring _initialize_weights_stable().
    std = math.sqrt(1.0 / input_size)
    weights = (0.5 * std) * jax.random.normal(
        kw, (output_size, input_size, q), dtype=jnp.float32)
    operator_probs = jnp.full((output_size, q), 0.1, jnp.float32).at[:, 0].set(0.5)
    bias = jnp.zeros((output_size,), jnp.float32)
    operator_mask = jnp.ones((output_size, q), jnp.bool_)

    x = jax.random.normal(kx, (batch, input_size), dtype=jnp.float32)
    expected = _reference_forward(x, weights, operator_probs, bias, operator_mask)

    # --- f32 path (numerically faithful to the reference) ---
    w32, ow_t, b_pad, tile_n = pack_selfonn_params(
        weights, operator_probs, bias, operator_mask,
        tile_n=512, compute_dtype=jnp.float32)
    out = self_onn_forward(x, w32, ow_t, b_pad,
                           q=q, out_size=output_size, tile_n=tile_n)
    out = jax.block_until_ready(out)
    assert out.shape == (batch, output_size)
    assert jnp.allclose(out, expected, atol=1e-4, rtol=1e-4), (
        f"f32 max abs diff = {jnp.max(jnp.abs(out - expected))}")

    # --- bf16 MXU path (halves weight HBM/VMEM traffic; looser tolerance) ---
    wbf, ow_tb, b_padb, tile_nb = pack_selfonn_params(
        weights, operator_probs, bias, operator_mask,
        tile_n=512, compute_dtype=jnp.bfloat16)
    out_bf = self_onn_forward(x, wbf, ow_tb, b_padb,
                              q=q, out_size=output_size, tile_n=tile_nb)
    out_bf = jax.block_until_ready(out_bf)
    assert jnp.allclose(out_bf, expected, atol=1e-1, rtol=5e-2), (
        f"bf16 max abs diff = {jnp.max(jnp.abs(out_bf - expected))}")

    # --- multi-step batch grid with a ragged edge (batch not divisible by block) ---
    x2 = jax.random.normal(kx2, (20, input_size), dtype=jnp.float32)
    out2 = self_onn_forward(x2, w32, ow_t, b_pad,
                            q=q, out_size=output_size, tile_n=tile_n,
                            block_batch=8)
    out2 = jax.block_until_ready(out2)
    expected2 = _reference_forward(x2, weights, operator_probs, bias, operator_mask)
    assert out2.shape == (20, output_size)
    assert jnp.allclose(out2, expected2, atol=1e-4, rtol=1e-4), (
        f"ragged max abs diff = {jnp.max(jnp.abs(out2 - expected2))}")

    print("KERNEL_OK")
</pallas_src>

<mosaic_0001>
module attributes {stable_mosaic.version = 11 : i64} {
  func.func @_selfonn_kernel(%arg0: i32, %arg1: i32, %arg2: memref<8x32xf32, #tpu.memory_space<vmem>>, %arg3: memref<32x640xf32, #tpu.memory_space<vmem>>, %arg4: memref<5x128xf32, #tpu.memory_space<vmem>>, %arg5: memref<1x128xf32, #tpu.memory_space<vmem>>, %arg6: memref<8x128xf32, #tpu.memory_space<vmem>>) attributes {dimension_semantics = [#tpu.dimension_semantics<parallel>, #tpu.dimension_semantics<parallel>], iteration_bounds = array<i64: 1, 1>, scalar_prefetch = 0 : i64, scratch_operands = 0 : i64, tpu.core_type = #tpu.core_type<tc>, window_params = [{transform_indices = @transform_0, window_bounds = array<i64: 8, 32>}, {transform_indices = @transform_1, window_bounds = array<i64: 32, 640>}, {transform_indices = @transform_2, window_bounds = array<i64: 5, 128>}, {transform_indices = @transform_3, window_bounds = array<i64: 1, 128>}, {transform_indices = @transform_4, window_bounds = array<i64: 8, 128>}]} {
    %c0 = arith.constant 0 : index
    %c0_0 = arith.constant 0 : index
    %0 = vector.load %arg2[%c0, %c0_0] : memref<8x32xf32, #tpu.memory_space<vmem>>, vector<8x32xf32>
    %cst = arith.constant -5.000000e+00 : f32
    %cst_1 = arith.constant 5.000000e+00 : f32
    %1 = vector.broadcast %cst : f32 to vector<8x32xf32>
    %2 = arith.maximumf %1, %0 : vector<8x32xf32>
    %3 = vector.broadcast %cst_1 : f32 to vector<8x32xf32>
    %4 = arith.minimumf %3, %2 : vector<8x32xf32>
    %c0_2 = arith.constant 0 : index
    %c0_3 = arith.constant 0 : index
    %5 = vector.load %arg3[%c0_2, %c0_3] : memref<32x640xf32, #tpu.memory_space<vmem>>, vector<32x640xf32>
    %cst_4 = arith.constant dense<0.000000e+00> : vector<8x640xf32>
    %6 = tpu.matmul %4, %5, %cst_4 {dimension_numbers = #tpu.dot_dimension_numbers<[1], [0], [0], [1], [0, 0, 1, 1], [], []>} : vector<8x32xf32>, vector<32x640xf32>, vector<8x640xf32> -> vector<8x640xf32>
    %c0_5 = arith.constant 0 : index
    %c0_6 = arith.constant 0 : index
    %7 = vector.load %arg4[%c0_5, %c0_6] : memref<5x128xf32, #tpu.memory_space<vmem>>, vector<5x128xf32>
    %c0_7 = arith.constant 0 : index
    %c0_8 = arith.constant 0 : index
    %8 = vector.load %arg5[%c0_7, %c0_8] : memref<1x128xf32, #tpu.memory_space<vmem>>, vector<1x128xf32>
    %9 = vector.shape_cast %8 : vector<1x128xf32> to vector<1x128xf32>
    %10 = vector.broadcast %9 : vector<1x128xf32> to vector<8x128xf32>
    %11 = vector.extract_strided_slice %6 {offsets = [0, 0], sizes = [8, 128], strides = [1, 1]} : vector<8x640xf32> to vector<8x128xf32>
    %cst_9 = arith.constant -1.000000e+01 : f32
    %cst_10 = arith.constant 1.000000e+01 : f32
    %12 = vector.broadcast %cst_9 : f32 to vector<8x128xf32>
    %13 = arith.maximumf %12, %11 : vector<8x128xf32>
    %14 = vector.broadcast %cst_10 : f32 to vector<8x128xf32>
    %15 = arith.minimumf %14, %13 : vector<8x128xf32>
    %16 = vector.extract_strided_slice %7 {offsets = [0, 0], sizes = [1, 128], strides = [1, 1]} : vector<5x128xf32> to vector<1x128xf32>
    %17 = vector.broadcast %16 : vector<1x128xf32> to vector<8x128xf32>
    %18 = arith.mulf %15, %17 : vector<8x128xf32>
    %19 = arith.addf %10, %18 : vector<8x128xf32>
    %20 = vector.extract_strided_slice %6 {offsets = [0, 128], sizes = [8, 128], strides = [1, 1]} : vector<8x640xf32> to vector<8x128xf32>
    %cst_11 = arith.constant -1.000000e+01 : f32
    %cst_12 = arith.constant 1.000000e+01 : f32
    %21 = vector.broadcast %cst_11 : f32 to vector<8x128xf32>
    %22 = arith.maximumf %21, %20 : vector<8x128xf32>
    %23 = vector.broadcast %cst_12 : f32 to vector<8x128xf32>
    %24 = arith.minimumf %23, %22 : vector<8x128xf32>
    %25 = math.sin %24 : vector<8x128xf32>
    %26 = vector.extract_strided_slice %7 {offsets = [1, 0], sizes = [1, 128], strides = [1, 1]} : vector<5x128xf32> to vector<1x128xf32>
    %27 = vector.broadcast %26 : vector<1x128xf32> to vector<8x128xf32>
    %28 = arith.mulf %25, %27 : vector<8x128xf32>
    %29 = arith.addf %19, %28 : vector<8x128xf32>
    %30 = vector.extract_strided_slice %6 {offsets = [0, 256], sizes = [8, 128], strides = [1, 1]} : vector<8x640xf32> to vector<8x128xf32>
    %cst_13 = arith.constant -1.000000e+01 : f32
    %cst_14 = arith.constant 1.000000e+01 : f32
    %31 = vector.broadcast %cst_13 : f32 to vector<8x128xf32>
    %32 = arith.maximumf %31, %30 : vector<8x128xf32>
    %33 = vector.broadcast %cst_14 : f32 to vector<8x128xf32>
    %34 = arith.minimumf %33, %32 : vector<8x128xf32>
    %35 = math.cos %34 : vector<8x128xf32>
    %36 = vector.extract_strided_slice %7 {offsets = [2, 0], sizes = [1, 128], strides = [1, 1]} : vector<5x128xf32> to vector<1x128xf32>
    %37 = vector.broadcast %36 : vector<1x128xf32> to vector<8x128xf32>
    %38 = arith.mulf %35, %37 : vector<8x128xf32>
    %39 = arith.addf %29, %38 : vector<8x128xf32>
    %40 = vector.extract_strided_slice %6 {offsets = [0, 384], sizes = [8, 128], strides = [1, 1]} : vector<8x640xf32> to vector<8x128xf32>
    %cst_15 = arith.constant -1.000000e+01 : f32
    %cst_16 = arith.constant 1.000000e+01 : f32
    %41 = vector.broadcast %cst_15 : f32 to vector<8x128xf32>
    %42 = arith.maximumf %41, %40 : vector<8x128xf32>
    %43 = vector.broadcast %cst_16 : f32 to vector<8x128xf32>
    %44 = arith.minimumf %43, %42 : vector<8x128xf32>
    %45 = math.tanh %44 : vector<8x128xf32>
    %46 = vector.extract_strided_slice %7 {offsets = [3, 0], sizes = [1, 128], strides = [1, 1]} : vector<5x128xf32> to vector<1x128xf32>
    %47 = vector.broadcast %46 : vector<1x128xf32> to vector<8x128xf32>
    %48 = arith.mulf %45, %47 : vector<8x128xf32>
    %49 = arith.addf %39, %48 : vector<8x128xf32>
    %50 = vector.extract_strided_slice %6 {offsets = [0, 512], sizes = [8, 128], strides = [1, 1]} : vector<8x640xf32> to vector<8x128xf32>
    %cst_17 = arith.constant -5.000000e+00 : f32
    %cst_18 = arith.constant 5.000000e+00 : f32
    %51 = vector.broadcast %cst_17 : f32 to vector<8x128xf32>
    %52 = arith.maximumf %51, %50 : vector<8x128xf32>
    %53 = vector.broadcast %cst_18 : f32 to vector<8x128xf32>
    %54 = arith.minimumf %53, %52 : vector<8x128xf32>
    %55 = math.exp %54 : vector<8x128xf32>
    %56 = vector.extract_strided_slice %7 {offsets = [4, 0], sizes = [1, 128], strides = [1, 1]} : vector<5x128xf32> to vector<1x128xf32>
    %57 = vector.broadcast %56 : vector<1x128xf32> to vector<8x128xf32>
    %58 = arith.mulf %55, %57 : vector<8x128xf32>
    %59 = arith.addf %49, %58 : vector<8x128xf32>
    %cst_19 = arith.constant -1.000000e+01 : f32
    %cst_20 = arith.constant 1.000000e+01 : f32
    %60 = vector.broadcast %cst_19 : f32 to vector<8x128xf32>
    %61 = arith.maximumf %60, %59 : vector<8x128xf32>
    %62 = vector.broadcast %cst_20 : f32 to vector<8x128xf32>
    %63 = arith.minimumf %62, %61 : vector<8x128xf32>
    %c0_21 = arith.constant 0 : index
    %c0_22 = arith.constant 0 : index
    %64 = vector.load %arg6[%c0_21, %c0_22] : memref<8x128xf32, #tpu.memory_space<vmem>>, vector<8x128xf32>
    tpu.vector_store %arg6[%c0_21, %c0_22], %63 {strides = array<i32>} : memref<8x128xf32, #tpu.memory_space<vmem>>, vector<8x128xf32>,
    return
  }
  func.func @transform_0(%arg0: i32, %arg1: i32) -> (i32, i32) {
    %c0_i32 = arith.constant 0 : i32
    %c0_i32_0 = arith.constant 0 : i32
    return %arg0, %c0_i32 : i32, i32
  }
  func.func @transform_1(%arg0: i32, %arg1: i32) -> (i32, i32) {
    %c0_i32 = arith.constant 0 : i32
    %c0_i32_0 = arith.constant 0 : i32
    return %c0_i32, %arg1 : i32, i32
  }
  func.func @transform_2(%arg0: i32, %arg1: i32) -> (i32, i32) {
    %c0_i32 = arith.constant 0 : i32
    %c0_i32_0 = arith.constant 0 : i32
    return %c0_i32, %arg1 : i32, i32
  }
  func.func @transform_3(%arg0: i32, %arg1: i32) -> (i32, i32) {
    %c0_i32 = arith.constant 0 : i32
    %c0_i32_0 = arith.constant 0 : i32
    return %c0_i32, %arg1 : i32, i32
  }
  func.func @transform_4(%arg0: i32, %arg1: i32) -> (i32, i32) {
    %c0_i32 = arith.constant 0 : i32
    return %arg0, %arg1 : i32, i32
  }
}

</mosaic_0001>

<bundles_post_ra>
// kernel: tpu_custom_call.1
= control target key start
LH: loop header
LB: loop body
LE: loop exit
PB: predicated region body
PF: predicated region fallthrough
CT: control target
= control target key end

     0   :  { %9 = vsyncpa [#allocation3], 0  ;;  %s871_s0 = inlined_call_operand.hbm [shape: f32[8,32], index: 0, kind: input, shape index: {}]   ;;  %s872_s1 = inlined_call_operand.hbm [shape: f32[32,640], index: 1, kind: input, shape index: {}]   ;;  %s873_s2 = inlined_call_operand.hbm [shape: f32[5,128], index: 2, kind: input, shape index: {}]   ;;  %s874_s3 = inlined_call_operand.vmem [shape: f32[1,128], index: 3, kind: input, shape index: {}]   ;;  %s875_s4 = inlined_call_operand.hbm [shape: f32[8,128], index: 4, kind: output, shape index: {}]  }
   0x1   :  { %10 = vsyncpa [#allocation6], 0 }
   0x2   :  { %11 = vsyncpa [#allocation4], 0  ;;  %s726_s15 = smov [#allocation5]  }
   0x3   :  { %s27_s16 = sshll.u32 %s726_s15, 4  ;;  %s28_s16 = int_to_ptr.vmem [resolvable:$true] %s27_s16 }
   0x4   :  { %s648_s17 = scalar_lea.vmem %s28_s16, 2560  ;;  %p653_p1 = scmp.lt.s32.totalorder %s28_s16, %s28_s16 }
   0x5   :  { %p649_p0 = scmp.ne.s32.totalorder %s28_s16, %s648_s17  ;;  %p654_p2 = scmp.lt.s32.totalorder %s648_s17, %s648_s17 }
   0x7   :  { %p655_p3 = por %p654_p2, %p653_p1 }
   0x9   :  { %p656_p4 = pnand %p655_p3, %p649_p0 }
   0xb   :  { %659 = shalt.err (!%p656_p4)
}
   0xc   :  { %s727_s18 = smov 640   ;;  %s728_s19 = smov 40  }
   0xd   :  { %33 = dma.hbm_to_vmem [thread:$0]  %s872_s1, 2560, %s28_s16, [#allocation6], %s727_s18, %s727_s18, %s728_s19  }
   0xe   :  { %s729_s22 = smov [#allocation2]   ;;  %s730_s24 = smov [#allocation7]  }
   0xf   :  { %s18_s23 = sshll.u32 %s729_s22, 4  ;;  %s40_s25 = sshll.u32 %s730_s24, 4  ;;  %s19_s23 = int_to_ptr.vmem [resolvable:$true] %s18_s23  ;;  %s41_s25 = int_to_ptr.vmem [resolvable:$true] %s40_s25 }
  0x10   :  { %s668_s26 = scalar_lea.vmem %s19_s23, 128  ;;  %p673_p6 = scmp.lt.s32.totalorder %s19_s23, %s19_s23 }
  0x11   :  { %p669_p5 = scmp.ne.s32.totalorder %s19_s23, %s668_s26  ;;  %p674_p7 = scmp.lt.s32.totalorder %s668_s26, %s668_s26 }
  0x13   :  { %p675_p8 = por %p674_p7, %p673_p6 }
  0x15   :  { %p676_p9 = pnand %p675_p8, %p669_p5 }
  0x17   :  { %679 = shalt.err (!%p676_p9)
}
  0x18   :  { %21 = dma.hbm_to_vmem [thread:$0]  %s871_s0, 128, %s19_s23, [#allocation3]  }
  0x19   :  { %s688_s29 = scalar_lea.vmem %s41_s25, 128  ;;  %p693_p11 = scmp.lt.s32.totalorder %s41_s25, %s41_s25 }
  0x1a   :  { %p689_p10 = scmp.ne.s32.totalorder %s41_s25, %s688_s29  ;;  %p694_p12 = scmp.lt.s32.totalorder %s688_s29, %s688_s29 }
  0x1c   :  { %p695_p13 = por %p694_p12, %p693_p11 }
  0x1e   :  { %p696_p0 = pnand %p695_p13, %p689_p10 }
  0x20   :  { %699 = shalt.err (!%p696_p0)
}
  0x21   :  { %43 = dma.hbm_to_vmem [thread:$0]  %s873_s2, 128, %s41_s25, [#allocation6]  }
  0x22   :  { %720 = dma.done.wait [#allocation3], 128  }
  0x23   :  { %721 = vsyncadd [#allocation3], 4294967168 }
  0x24   :  { %722 = dma.done.wait [#allocation6], 2688  }
  0x25   :  { %723 = vsyncadd [#allocation6], 4294964608  ;;  %v731_v0 = vmov 0.0   ;;  %v74_v1 = vld [vmem:[#allocation5 + $0x80] sm:$0xff]  ;;  %v76_v2 = vld [vmem:[#allocation5 + $0x90] sm:$0xff]  ;;  %vm78_vm0 = vcmask 261120  }
  0x26   :  { %146 = vmatprep.mubr.f32.mxu0 %v731_v0  ;;  %217 = vmatprep.mubr.f32.mxu1 %v731_v0  ;;  %v73_v3 = vld [vmem:[#allocation5 + $0x78] sm:$0xff]  ;;  %v75_v4 = vld [vmem:[#allocation5 + $0x88] sm:$0xff]  ;;  %v68_v7 = vld [vmem:[#allocation5 + $0x50] sm:$0xff]  ;;  %vm732_vm1 = vmmov 0   ;;  %v733_v48 = vmov 683565275  }
  0x27   :  { %106 = vmatprep.subr.mxu0 %v74_v1  ;;  %177 = vmatprep.subr.mxu1 %v76_v2  ;;  %v69_v5 = vld [vmem:[#allocation5 + $0x58] sm:$0xff]  ;;  %v71_v6 = vld [vmem:[#allocation5 + $0x68] sm:$0xff]  ;;  %v70_v8 = vld [vmem:[#allocation5 + $0x60] sm:$0xff]  ;;  %v734_v50 = vmov 2475754826  }
  0x28   :  { %107 = vmatpush1.msra.mxu0 %v73_v3  ;;  %178 = vmatpush1.msra.mxu1 %v75_v4  ;;  %v64_v9 = vld [vmem:[#allocation5 + $0x30] sm:$0xff]  ;;  %v66_v10 = vld [vmem:[#allocation5 + $0x40] sm:$0xff]  ;;  %v63_v11 = vld [vmem:[#allocation5 + $0x28] sm:$0xff]  ;;  %v735_v52 = vmov 2131351028  }
  0x29   :  { %108 = vmatprep.subr.mxu0 %v69_v5  ;;  %179 = vmatprep.subr.mxu1 %v71_v6  ;;  %v65_v12 = vld [vmem:[#allocation5 + $0x38] sm:$0xff]  ;;  %v59_v13 = vld [vmem:[#allocation5 + $0x8] sm:$0xff]  ;;  %v58_v15 = vld [vmem:[#allocation5] sm:$0xff]  ;;  %v736_v54 = vmov 2102212464  }
  0x2a   :  { %109 = vmatpush1.msra.mxu0 %v68_v7  ;;  %180 = vmatpush1.msra.mxu1 %v70_v8  ;;  %v61_v14 = vld [vmem:[#allocation5 + $0x18] sm:$0xff]  ;;  %v60_v16 = vld [vmem:[#allocation5 + $0x10] sm:$0xff]  ;;  %v67_v21 = vld [vmem:[#allocation5 + $0x48] sm:$0xff]  ;;  %v737_v56 = vmov 920167782  }
  0x2b   :  { %110 = vmatprep.subr.mxu0 %v64_v9  ;;  %181 = vmatprep.subr.mxu1 %v66_v10  ;;  %v55_v17 = vld [vmem:[#allocation2] sm:$0xff]  ;;  %v72_v20 = vld [vmem:[#allocation5 + $0x70] sm:$0xff]  ;;  %v62_v22 = vld [vmem:[#allocation5 + $0x20] sm:$0xff] }
  0x2c   :  { %111 = vmatpush1.msra.mxu0 %v63_v11  ;;  %182 = vmatpush1.msra.mxu1 %v65_v12  ;;  %v571_v18 = vclamps-f32 %v55_v17, 5.0  ;;  %v77_v19 = vld [vmem:[#allocation5 + $0x98] sm:$0xff] }
  0x2d   :  { %112 = vmatprep.subr.mxu0 %v59_v13  ;;  %183 = vmatprep.subr.mxu1 %v61_v14 }
  0x2e   :  { %113 = vmatpush1.msra.mxu0 %v58_v15  ;;  %184 = vmatpush1.msra.mxu1 %v60_v16 }
  0x2f   :  { %572 = vmatmul.mubr.msk.f32.vlgmr.msra.gmra.mxu0 %vm78_vm0, %v571_v18  ;;  %573 = vmatmul.mubr.msk.f32.vlgmr.msra.gmra.mxu1 %vm78_vm0, %v571_v18 }
  0x30   :  { %595 = vmatprep.subr.mxu0 %v731_v0  ;;  %603 = vmatprep.mubr.msk.f32.mxu0 %vm732_vm1, %v731_v0 }
  0x31   :  { %596 = vmatpush3.msra.mxu0 %v77_v19 }
  0x32   :  { %597 = vmatprep.subr.mxu0 %v731_v0 }
  0x33   :  { %598 = vmatpush3.msra.mxu0 %v72_v20 }
  0x34   :  { %599 = vmatprep.subr.mxu0 %v731_v0 }
  0x35   :  { %600 = vmatpush3.msra.mxu0 %v67_v21 }
  0x36   :  { %601 = vmatprep.subr.mxu0 %v731_v0  ;;  %v738_v0 = vmov 1326507024  }
  0x37   :  { %602 = vmatpush3.msra.mxu0 %v62_v22 }
  0x38   :  { %604 = vmatmul.mubr.msk.f32.vlgmr.msra.gmra.mxu0 %vm78_vm0, %v571_v18 }
  0xef   :  { %v777_v23 = vpop.f32.mrf.mxu0  ;;  %v219_v24 = vpop.f32.mrf.mxu1 }
  0xf0   :  { %v779_v25 = vclamps-f32 %v219_v24, 10.0 }
  0xf1   :  { %v150_v26 = vpop.f32.mrf.mxu0 }
  0xf2   :  { %v424_v27 = vand.u32 2147483647, %v779_v25  ;;  %v427_v28 = vand.u32 2139095040, %v779_v25  ;;  %v783_v29 = vclamps-f32 %v150_v26, 10.0  ;;  %vm426_vm0 = vcmp.lt.s32.totalorder %v779_v25, 0 }
  0xf4   :  { %v428_v30 = vshrl.u32 %v427_v28, 23  ;;  %v431_v31 = vand.u32 8388607, %v424_v27  ;;  %v315_v32 = vand.u32 2139095040, %v783_v29  ;;  %v312_v34 = vand.u32 2147483647, %v783_v29 }
  0xf5   :  { %vm834_vm1 = vcmp.le.f32.partialorder %v424_v27, 0.7853982 }
  0xf6   :  { %v583_v33 = vadd.s32 4294967169, %v428_v30  ;;  %v316_v35 = vshrl.u32 %v315_v32, 23  ;;  %v432_v38 = vor.u32 8388608, %v431_v31  ;;  %v319_v42 = vand.u32 8388607, %v312_v34 }
  0xf8   :  { %v434_v36 = vadd.s32 1, %v583_v33  ;;  %v789_v37 = vpop.f32.mrf.mxu0  ;;  %v578_v39 = vadd.s32 4294967169, %v316_v35  ;;  %v793_v46 = vshll.u32 %v432_v38, 8  ;;  %v320_v58 = vor.u32 8388608, %v319_v42 }
  0xfa   :  { %vm435_vm2 = vcmp.gt.s32.totalorder %v434_v36, 0  ;;  %v605_v40 = vpop.f32.mrf.mxu0  ;;  %v322_v43 = vadd.s32 1, %v578_v39  ;;  %v360_v19 = vshll.u32 %v320_v58, 8 }
  0xfb   :  { %v436_v41 = vsel %vm435_vm2, %v434_v36, 0  ;;  %vm314_vm2 = vcmp.lt.s32.totalorder %v783_v29, 0 }
  0xfc   :  { %v438_v44 = vand.u32 31, %v436_v41  ;;  %v437_v45 = vshrl.u32 %v436_v41, 5  ;;  %vm323_vm3 = vcmp.gt.s32.totalorder %v322_v43, 0 }
  0xfd   :  { %v324_v5 = vsel %vm323_vm3, %v322_v43, 0  ;;  %vm847_vm3 = vcmp.le.f32.partialorder %v312_v34, 0.7853982 }
  0xfe   :  { %v439_v47 = vsub.s32 32, %v438_v44  ;;  %v441_v49 = vshll.u32 %v733_v48, %v438_v44  ;;  %v444_v51 = vshll.u32 %v734_v50, %v438_v44  ;;  %v447_v53 = vshll.u32 %v735_v52, %v438_v44 }
  0xff   :  { %v450_v55 = vshll.u32 %v736_v54, %v438_v44  ;;  %v453_v57 = vshll.u32 %v737_v56, %v438_v44  ;;  %vm456_vm4 = vcmp.lt.s32.totalorder %v437_v45, 1  ;;  %vm458_vm5 = vcmp.lt.s32.totalorder %v437_v45, 3 }
 0x100   :  { %v440_v59 = vshrl.u32 %v733_v48, %v439_v47  ;;  %v442_v60 = vshrl.u32 %v734_v50, %v439_v47  ;;  %v445_v61 = vshrl.u32 %v735_v52, %v439_v47  ;;  %v448_v62 = vshrl.u32 %v736_v54, %v439_v47 }
 0x101   :  { %v451_v63 = vshrl.u32 %v737_v56, %v439_v47  ;;  %v454_v1 = vshrl.u32 %v738_v0, %v439_v47  ;;  %vm459_vm6 = vcmp.lt.s32.totalorder %v437_v45, 4  ;;  %v326_v8 = vand.u32 31, %v324_v5 }
 0x102   :  { %v443_v2 = vor.u32 %v442_v60, %v441_v49  ;;  %v446_v3 = vor.u32 %v445_v61, %v444_v51  ;;  %v449_v4 = vor.u32 %v448_v62, %v447_v53  ;;  %vm457_vm7 = vcmp.lt.s32.totalorder %v437_v45, 2 }
 0x103   :  { %v452_v6 = vor.u32 %v451_v63, %v450_v55  ;;  %v455_v7 = vor.u32 %v454_v1, %v453_v57  ;;  %v327_v16 = vsub.s32 32, %v326_v8  ;;  %v325_v24 = vshrl.u32 %v324_v5, 5 }
 0x104   :  { %v460_v9 = vsel %vm456_vm4, %v440_v59, %v443_v2  ;;  %v461_v10 = vsel %vm459_vm6, %v449_v4, 2102212464  ;;  %v464_v11 = vsel %vm456_vm4, %v443_v2, %v446_v3  ;;  %v468_v12 = vsel %vm456_vm4, %v446_v3, %v449_v4 }
 0x105   :  { %v462_v13 = vsel %vm458_vm5, %v446_v3, %v461_v10  ;;  %v465_v14 = vsel %vm459_vm6, %v452_v6, 920167782  ;;  %v469_v15 = vsel %vm459_vm6, %v455_v7, 1326507024  ;;  %v329_v32 = vshll.u32 %v733_v48, %v326_v8 }
 0x106   :  { %v466_v17 = vsel %vm458_vm5, %v449_v4, %v465_v14  ;;  %v470_v18 = vsel %vm458_vm5, %v452_v6, %v469_v15  ;;  %v463_v20 = vsel %vm457_vm7, %v460_v9, %v462_v13  ;;  %v330_v33 = vshrl.u32 %v734_v50, %v327_v16 }
 0x107   :  { %v467_v21 = vsel %vm457_vm7, %v464_v11, %v466_v17  ;;  %v471_v22 = vsel %vm457_vm7, %v468_v12, %v470_v18  ;;  %v332_v35 = vshll.u32 %v734_v50, %v326_v8  ;;  %v333_v36 = vshrl.u32 %v735_v52, %v327_v16 }
 0x108   :  { %v801_v26 = vmul.u32.u64.low %v793_v46, %v471_v22  ;;  %v802_v28 = vmul.u32.u64.high %v793_v46, %v471_v22, %v801_v26  ;;  %v805_v30 = vmul.u32.u64.low %v793_v46, %v467_v21  ;;  %v806_v31 = vmul.u32.u64.high %v793_v46, %v467_v21, %v805_v30 }
 0x109   :  { %v335_v38 = vshll.u32 %v735_v52, %v326_v8  ;;  %v336_v39 = vshrl.u32 %v736_v54, %v327_v16  ;;  %v338_v40 = vshll.u32 %v736_v54, %v326_v8  ;;  %v339_v41 = vshrl.u32 %v737_v56, %v327_v16 }
 0x10a   :  { %v331_v42 = vor.u32 %v330_v33, %v329_v32  ;;  %v334_v43 = vor.u32 %v333_v36, %v332_v35  ;;  %v341_v44 = vshll.u32 %v737_v56, %v326_v8  ;;  %v342_v45 = vshrl.u32 %v738_v0, %v327_v16 }
 0x10b   :  { %v479_v47 = vmul.u32 %v793_v46, %v463_v20  ;;  %vm481_vm8 = vc.u32 %v802_v28, %v805_v30  ;;  %v482_v49 = vadd.s32 1, %v806_v31  ;;  %v337_v51 = vor.u32 %v336_v39, %v335_v38 }
 0x10c   :  { %v328_v53 = vshrl.u32 %v733_v48, %v327_v16  ;;  %v340_v50 = vor.u32 %v339_v41, %v338_v40  ;;  %v343_v55 = vor.u32 %v342_v45, %v341_v44  ;;  %vm344_vm9 = vcmp.lt.s32.totalorder %v325_v24, 1 }
 0x10d   :  { %v483_v52 = vsel %vm481_vm8, %v482_v49, %v806_v31  ;;  %vm346_vm10 = vcmp.lt.s32.totalorder %v325_v24, 3  ;;  %vm347_vm11 = vcmp.lt.s32.totalorder %v325_v24, 4  ;;  %v352_v54 = vsel %vm344_vm9, %v331_v42, %v334_v43 }
 0x10e   :  { %v484_v56 = vadd.s32 %v483_v52, %v479_v47  ;;  %v349_v57 = vsel %vm347_vm11, %v337_v51, 2102212464  ;;  %v353_v58 = vsel %vm347_vm11, %v340_v50, 920167782  ;;  %v356_v46 = vsel %vm344_vm9, %v334_v43, %v337_v51 }
 0x10f   :  { %vm345_vm12 = vcmp.lt.s32.totalorder %v325_v24, 2  ;;  %v348_v59 = vsel %vm344_vm9, %v328_v53, %v331_v42  ;;  %v354_v60 = vsel %vm346_vm10, %v337_v51, %v353_v58  ;;  %v357_v61 = vsel %vm347_vm11, %v343_v55, 1326507024 }
 0x110   :  { %v485_v62 = vadd.s32 536870912, %v484_v56  ;;  %v350_v63 = vsel %vm346_vm10, %v334_v43, %v349_v57  ;;  %v355_v0 = vsel %vm345_vm12, %v352_v54, %v354_v60  ;;  %v358_v48 = vsel %vm346_vm10, %v340_v50, %v357_v61 }
 0x111   :  { %v359_v1 = vsel %vm345_vm12, %v356_v46, %v358_v48  ;;  %v816_v2 = vmul.u32.u64.low %v360_v19, %v355_v0  ;;  %v817_v3 = vmul.u32.u64.high %v360_v19, %v355_v0, %v816_v2  ;;  %v351_v7 = vsel %vm345_vm12, %v348_v59, %v350_v63 }
 0x112   :  { %v819_v4 = vshrl.u32 %v485_v62, 30  ;;  %v821_v5 = vmul.u32.u64.low %v360_v19, %v359_v1  ;;  %v822_v6 = vmul.u32.u64.high %v360_v19, %v359_v1, %v821_v5  ;;  %v367_v11 = vmul.u32 %v360_v19, %v351_v7 }
 0x113   :  { %v370_v9 = vadd.s32 1, %v817_v3  ;;  %v480_v26 = vadd.s32 %v805_v30, %v802_v28  ;;  %v221_v5 = vpop.f32.mrf.mxu1  ;;  %vm404_vm10 = vweird.f32 %v783_v29  ;;  %vm516_vm11 = vweird.f32 %v779_v25 }
 0x114   :  { %v487_v8 = vshll.u32 %v819_v4, 30  ;;  %vm369_vm13 = vc.u32 %v822_v6, %v816_v2  ;;  %v368_v51 = vadd.s32 %v816_v2, %v822_v6  ;;  %v510_v0 = vsub.s32 4, %v819_v4 }
 0x115   :  { %v371_v12 = vsel %vm369_vm13, %v370_v9, %v817_v3  ;;  %v304_v3 = vlaneseq  ;;  %v588_v6 = vclamps-f32 %v789_v37, 5.0  ;;  %v587_v34 = vclamps-f32 %v221_v5, 10.0 }
 0x116   :  { %v488_v10 = vsub.s32 %v484_v56, %v487_v8  ;;  %v372_v14 = vadd.s32 %v371_v12, %v367_v11  ;;  %v511_v8 = vsel %vm426_vm0, %v510_v0, %v819_v4 }
 0x117   :  { %v305_v9 = vshrl.u32 %v304_v3, 7  ;;  %v544_v11 = vmul.f32 1.442695, %v588_v6 }
 0x118   :  { %v490_v13 = vsub.s32 0, %v488_v10  ;;  %v373_v16 = vadd.s32 536870912, %v372_v14 }
 0x119   :  { %v306_v37 = vsub.s32 0, %v305_v9  ;;  %v418_v4 = vsub.s32 1, %v305_v9 }
 0x11a   :  { %v584_v15 = vmin.u32 %v490_v13, %v488_v10  ;;  %v374_v18 = vshrl.u32 %v373_v16, 30  ;;  %v513_v13 = vsel %vm834_vm1, 0, %v511_v8 }
 0x11b   :  { %v517_v16 = vand.u32 3, %v513_v13 }
 0x11c   :  { %v492_v17 = vclz %v584_v15  ;;  %v375_v21 = vshll.u32 %v374_v18, 30  ;;  %v398_v27 = vsub.s32 4, %v374_v18 }
 0x11d   :  { %vm519_vm4 = vcmp.eq.s32.totalorder %v517_v16, 0  ;;  %vm522_vm5 = vcmp.eq.s32.totalorder %v517_v16, 2  ;;  %vm518_vm7 = vcmp.lt.s32.totalorder %v517_v16, 2 }
 0x11e   :  { %v585_v20 = vadd.s32 4294967294, %v492_v17  ;;  %v376_v22 = vsub.s32 %v372_v14, %v375_v21  ;;  %v399_v7 = vsel %vm314_vm2, %v398_v27, %v374_v18  ;;  %v294_v17 = vld [vmem:[#allocation7] sm:$0x1f] }
 0x120   :  { %vm586_vm14 = vcmp.lt.s32.totalorder %v585_v20, 0  ;;  %v378_v32 = vsub.s32 0, %v376_v22 }
 0x121   :  { %v495_v24 = vsel %vm586_vm14, 0, %v585_v20 }
 0x122   :  { %v496_v31 = vsub.s32 32, %v495_v24  ;;  %v500_v19 = vsub.s32 4294967266, %v495_v24  ;;  %v497_v33 = vshll.u32 %v488_v10, %v495_v24  ;;  %v579_v38 = vmin.u32 %v378_v32, %v376_v22 }
 0x123   :  { %v401_v10 = vsel %vm847_vm3, 0, %v399_v7  ;;  %v307_v24 = vrot.slane %v294_v17, %v306_v37 }
 0x124   :  { %v498_v35 = vshrl.u32 %v480_v26, %v496_v31  ;;  %v501_v36 = vadd.s32 127, %v500_v19  ;;  %v380_v41 = vclz %v579_v38  ;;  %v405_v15 = vadd.s32 3, %v401_v10 }
 0x125   :  { %v538_v38 = vsub.s32 3, %v305_v9 }
 0x126   :  { %v499_v39 = vor.u32 %v498_v35, %v497_v33  ;;  %v502_v40 = vshll.u32 %v501_v36, 23  ;;  %v580_v43 = vadd.s32 4294967294, %v380_v41  ;;  %v406_v21 = vand.u32 3, %v405_v15 }
 0x127   :  { %v419_v35 = vrot.slane %v294_v17, %v418_v4  ;;  %v529_v36 = vsub.s32 2, %v305_v9 }
 0x128   :  { %v503_v42 = vor.u32 4788187, %v502_v40  ;;  %v506_v45 = vcvt.s32.f32 %v499_v39  ;;  %vm581_vm15 = vcmp.lt.s32.totalorder %v580_v43, 0  ;;  %vm411_vm6 = vcmp.eq.s32.totalorder %v406_v21, 2 }
 0x129   :  { %v383_v47 = vsel %vm581_vm15, 0, %v580_v43  ;;  %v548_v40 = vsub.s32 4, %v305_v9  ;;  %vm408_vm8 = vcmp.eq.s32.totalorder %v406_v21, 0  ;;  %vm407_vm9 = vcmp.lt.s32.totalorder %v406_v21, 2 }
 0x12a   :  { %v504_v44 = vand.u32 2147483647, %v503_v42  ;;  %v384_v28 = vsub.s32 32, %v383_v47  ;;  %v388_v30 = vsub.s32 4294967266, %v383_v47  ;;  %v385_v50 = vshll.u32 %v376_v22, %v383_v47 }
 0x12b   :  { %v576_v22 = vclamps-f32 %v777_v23, 10.0  ;;  %v575_v23 = vld [vmem:[%s874_s3] ss:$0 sm:$0xff]  ;;  %v530_v47 = vrot.slane %v294_v17, %v529_v36  ;;  %s739_s3 = smov [#allocation8]  }
 0x12c   :  { %v507_v49 = vmul.f32 %v506_v45, %v504_v44  ;;  %v386_v55 = vshrl.u32 %v368_v51, %v384_v28  ;;  %v389_v52 = vadd.s32 127, %v388_v30  ;;  %s561_s5 = sshll.u32 %s739_s3, 4  ;;  %s562_s5 = int_to_ptr.vmem [resolvable:$true] %s561_s5 }
 0x12d   :  { %v308_v41 = vmul.f32 %v576_v22, %v307_v24  ;;  %s700_s6 = scalar_lea.vmem %s562_s5, 128  ;;  %p705_p2 = scmp.lt.s32.totalorder %s562_s5, %s562_s5 }
 0x12e   :  { %v508_v53 = vxor.u32 2147483648, %v507_v49  ;;  %v387_v57 = vor.u32 %v386_v55, %v385_v50  ;;  %v390_v58 = vshll.u32 %v389_v52, 23  ;;  %v539_v50 = vrot.slane %v294_v17, %v538_v38  ;;  %p701_p1 = scmp.ne.s32.totalorder %s562_s5, %s700_s6  ;;  %p706_p3 = scmp.lt.s32.totalorder %s700_s6, %s700_s6 }
 0x12f   :  { %v309_v30 = vadd.f32 %v575_v23, %v308_v41  ;;  %v549_v55 = vrot.slane %v294_v17, %v548_v40 }
 0x130   :  { %v509_v56 = vsel %vm426_vm0, %v508_v53, %v507_v49  ;;  %v391_v59 = vor.u32 4788187, %v390_v58  ;;  %v394_v61 = vcvt.s32.f32 %v387_v57  ;;  %p707_p4 = por %p706_p3, %p705_p2 }
 0x131   :  { %v512_v46 = vsel %vm834_vm1, %v779_v25, %v509_v56 }
 0x132   :  { %628 = vcosq.f32 %v512_v46  ;;  %v392_v60 = vand.u32 2147483647, %v391_v59  ;;  %p708_p5 = pnand %p707_p4, %p701_p1 }
 0x133   :  { %630 = vsinq.f32 %v512_v46 }
 0x134   :  { %v395_v62 = vmul.f32 %v394_v61, %v392_v60 }
 0x136   :  { %v396_v63 = vxor.u32 2147483648, %v395_v62 }
 0x138   :  { %v397_v1 = vsel %vm314_vm2, %v396_v63, %v395_v62 }
 0x139   :  { %v400_v2 = vsel %vm847_vm3, %v783_v29, %v397_v1 }
 0x13a   :  { %632 = vcosq.f32 %v400_v2 }
 0x13b   :  { %634 = vsinq.f32 %v400_v2 }
 0x13c   :  { %636 = vtanh.f32 %v587_v34 }
 0x13d   :  { %638 = vpow2.f32 %v544_v11 }
 0x13f   :  { %v629_v12 = vpop.eup %628 }
 0x140   :  { %v631_v14 = vpop.eup %630  ;;  %v523_v20 = vxor.u32 2147483648, %v629_v12 }
 0x141   :  { %v520_v18 = vxor.u32 2147483648, %v631_v14 }
 0x142   :  { %v524_v19 = vsel %vm522_vm5, %v523_v20, %v631_v14 }
 0x143   :  { %v521_v31 = vsel %vm519_vm4, %v629_v12, %v520_v18 }
 0x144   :  { %v525_v43 = vsel %vm518_vm7, %v521_v31, %v524_v19 }
 0x145   :  { %v526_v51 = vsel %vm516_vm11, nan, %v525_v43 }
 0x146   :  { %v531_v56 = vmul.f32 %v530_v47, %v526_v51 }
 0x147   :  { %v633_v26 = vpop.eup %632 }
 0x148   :  { %v635_v32 = vpop.eup %634  ;;  %v412_v33 = vxor.u32 2147483648, %v633_v26 }
 0x149   :  { %v409_v39 = vxor.u32 2147483648, %v635_v32  ;;  %v637_v28 = vpop.eup %636 }
 0x14a   :  { %v413_v42 = vsel %vm411_vm6, %v412_v33, %v635_v32  ;;  %v639_v52 = vpop.eup %638  ;;  %v540_v58 = vmul.f32 %v637_v28, %v539_v50 }
 0x14b   :  { %v410_v44 = vsel %vm408_vm8, %v633_v26, %v409_v39  ;;  %v550_v46 = vmul.f32 %v639_v52, %v549_v55 }
 0x14c   :  { %v414_v45 = vsel %vm407_vm9, %v410_v44, %v413_v42 }
 0x14d   :  { %v415_v49 = vsel %vm404_vm10, nan, %v414_v45 }
 0x14e   :  { %v420_v53 = vmul.f32 %v419_v35, %v415_v49 }
 0x150   :  { %v421_v54 = vadd.f32 %v420_v53, %v309_v30 }
 0x152   :  { %v532_v57 = vadd.f32 %v531_v56, %v421_v54 }
 0x154   :  { %v541_v59 = vadd.f32 %v540_v58, %v532_v57 }
 0x156   :  { %v551_v29 = vadd.f32 %v550_v46, %v541_v59 }
 0x158   :  { %v589_v60 = vclamps-f32 %v551_v29, 10.0 }
 0x15a   :  { %554 = vst [vmem:[#allocation8] sm:$0xff] %v589_v60 }
 0x15b   :  { %711 = shalt.err (!%p708_p5)
}
 0x15c   :  { %564 = dma.vmem_to_hbm [thread:$0]  %s562_s5, 128, %s875_s4, [#allocation4]  }
 0x15d   :  { %724 = dma.done.wait [#allocation4], 128  }
 0x15e   :  { %725 = vsyncadd [#allocation4], 4294967168 }
 0x15f   :  { %568 = vsyncpa [#allocation3], 1 }
 0x160   :  { %569 = vsyncpa [#allocation6], 1 }
 0x161   :  { %570 = vsyncpa [#allocation4], 1 }

</bundles_post_ra>
